<compile_context>
chip_gen: v5e
topology: v5e:2x2
jax: 0.10.0
libtpu: 0.0.40
codegen_flags: <defaults>
</compile_context>

<pallas_src>
import jax
import jax.numpy as jnp
from jax.experimental import pallas as pl
from jax.experimental.pallas import tpu as pltpu


# ----------------------------------------------------------------------------
# Kernels
# ----------------------------------------------------------------------------
def _scale_scalar_kernel(w_ref, x_ref, o_ref):
    # w_ref: SMEM (1,) f32 scale weight (s_dim == 1 case).
    # x_ref / o_ref: VMEM (TM, NLANES) tile.
    # Single scalar cast (free), multiply natively in feats' dtype.
    w = w_ref[0].astype(o_ref.dtype)
    o_ref[...] = x_ref[...] * w


def _scale_vector_kernel(w_ref, x_ref, o_ref):
    # w_ref: VMEM (1, W) scale row already cast to feats' dtype.
    # x_ref / o_ref: VMEM (TM, W) tile. Broadcast multiply, no casts.
    o_ref[...] = x_ref[...] * w_ref[...]


# ----------------------------------------------------------------------------
# Tiling helpers
# ----------------------------------------------------------------------------
_LANE = 128
_LANE_CANDIDATES = (1024, 512, 256, 128)
_TARGET_TILE_BYTES = 2 << 20        # ~2 MiB per buffer -> ~8 MiB double-buffered
_MIN_PALLAS_BYTES = 1 << 20         # below this, Pallas call overhead dominates
_VMEM_LIMIT_BYTES = 32 << 20        # explicit scoped-VMEM budget (fits v7x/v5e)


def _sublane_multiple(dtype) -> int:
    itemsize = jnp.dtype(dtype).itemsize
    if itemsize >= 4:
        return 8
    if itemsize == 2:
        return 16
    return 32


def _pick_nlanes(total: int):
    for cand in _LANE_CANDIDATES:
        if total % cand == 0:
            return cand
    return None


def _pick_tm(m: int, nlanes: int, dtype) -> int:
    """Rows per tile: ~2 MiB/buffer, sublane-aligned, >=2 tiles when possible."""
    sub = _sublane_multiple(dtype)
    itemsize = jnp.dtype(dtype).itemsize
    tm = _TARGET_TILE_BYTES // (nlanes * itemsize)
    tm = max(sub, (tm // sub) * sub)
    if tm >= m:
        if m >= 2 * sub:
            # Split into >=2 tiles so both v7x TensorCores get a block;
            # on single-TC chips this only adds ~0.35 us of per-step overhead.
            half = -(-m // 2)
            tm = max(sub, -(-half // sub) * sub)
        else:
            tm = m  # full-extent block (always legal)
    return tm


def _pick_fold(m: int, n: int):
    """Find k (divisor of m) so k*n is a multiple of 128, preferring >=512 lanes."""
    if n % _LANE == 0 and n >= 512:
        return 1
    best = 1 if n % _LANE == 0 else None
    limit = min(m, max(1, 4096 // max(n, 1)))
    for k in range(1, limit + 1):
        if m % k:
            continue
        w = k * n
        if w % _LANE:
            continue
        best = k
        if w >= 512:
            break
    return best


def _compiler_params():
    return pltpu.CompilerParams(
        dimension_semantics=("parallel",),      # shard tiles across v7x TCs
        vmem_limit_bytes=_VMEM_LIMIT_BYTES,
    )


# ----------------------------------------------------------------------------
# Wrappers
# ----------------------------------------------------------------------------
def _scale_scalar_flat(flat: jax.Array, scale_w: jax.Array) -> jax.Array:
    """Kernel path for a flat array whose size is a multiple of 128."""
    dtype = flat.dtype
    total = flat.size
    nlanes = _pick_nlanes(total)
    x2d = flat.reshape(-1, nlanes)
    m = x2d.shape[0]
    tm = _pick_tm(m, nlanes, dtype)
    grid = (pl.cdiv(m, tm),)

    out2d = pl.pallas_call(
        _scale_scalar_kernel,
        out_shape=jax.ShapeDtypeStruct((m, nlanes), dtype),
        grid=grid,
        in_specs=[
            pl.BlockSpec(memory_space=pltpu.MemorySpace.SMEM),   # (1,) f32 weight
            pl.BlockSpec((tm, nlanes), lambda i: (i, 0)),        # feats tile
        ],
        out_specs=pl.BlockSpec((tm, nlanes), lambda i: (i, 0)),
        compiler_params=_compiler_params(),
    )(scale_w.astype(jnp.float32).reshape(1), x2d)
    return out2d.reshape(-1)


def _scale_scalar(feats: jax.Array, scale_w: jax.Array) -> jax.Array:
    """s_dim == 1: scalar broadcast multiply over a lane-dense flattening."""
    orig_shape = feats.shape
    dtype = feats.dtype
    total = feats.size
    flat = feats.reshape(-1)

    rem = total % _LANE
    if rem == 0:
        return _scale_scalar_flat(flat, scale_w).reshape(orig_shape)

    # Ragged element count: kernel over the largest 128-multiple prefix,
    # plain jnp multiply on the <128-element tail (no pad/copy of the tensor).
    prefix = total - rem
    w_scalar = scale_w.astype(dtype).reshape(())
    if prefix == 0:
        return (flat * w_scalar).reshape(orig_shape)
    head = _scale_scalar_flat(flat[:prefix], scale_w)
    tail = flat[prefix:] * w_scalar
    return jnp.concatenate([head, tail]).reshape(orig_shape)


def _scale_vector(feats: jax.Array, scale_w: jax.Array) -> jax.Array:
    """s_dim > 1: per-channel scale; requires s_dim == feats.shape[-1]."""
    orig_shape = feats.shape
    dtype = feats.dtype
    n = orig_shape[-1]
    assert scale_w.shape[-1] == n, (
        "s_dim > 1 requires s_dim == feats.shape[-1] for PyTorch broadcasting")

    w = scale_w.astype(dtype).reshape(1, n)
    m = feats.size // n
    x2d = feats.reshape(m, n)

    # Lane-widen: fold k rows into one so the output last dim is a wide
    # multiple of 128 (unmasked full-width stores).
    k = _pick_fold(m, n)
    if k is None:
        # Cannot present a lane-dense slab -> XLA handles the (small) multiply.
        return (feats * scale_w.astype(dtype)).reshape(orig_shape)

    mw, nw = m // k, k * n
    x2d = x2d.reshape(mw, nw)
    w2d = jnp.tile(w, (1, k))            # (1, k*n), a few hundred bytes at most

    tm = _pick_tm(mw, nw, dtype)
    grid = (pl.cdiv(mw, tm),)

    out2d = pl.pallas_call(
        _scale_vector_kernel,
        out_shape=jax.ShapeDtypeStruct((mw, nw), dtype),
        grid=grid,
        in_specs=[
            pl.BlockSpec((1, nw), lambda i: (0, 0)),             # scale row
            pl.BlockSpec((tm, nw), lambda i: (i, 0)),            # feats tile
        ],
        out_specs=pl.BlockSpec((tm, nw), lambda i: (i, 0)),
        compiler_params=_compiler_params(),
    )(w2d, x2d)
    return out2d.reshape(orig_shape)


def scale_layer_forward(feats: jax.Array, scale_weights: jax.Array,
                        *, force_pallas: bool = False) -> jax.Array:
    """Pallas implementation of Scale_layer.forward (feats * scale_weights)."""
    nbytes = feats.size * jnp.dtype(feats.dtype).itemsize
    if not force_pallas and nbytes < _MIN_PALLAS_BYTES:
        # Tiny per-box feature tensors (the module's real inputs): let XLA fuse
        # the multiply into neighboring ops; a standalone kernel would be pure
        # call/DMA overhead.
        return feats * scale_weights.astype(feats.dtype)

    if scale_weights.size == 1:
        return _scale_scalar(feats, scale_weights.reshape(1))
    return _scale_vector(feats, scale_weights.reshape(-1))


def init_scale_weights(key, s_dim: int = 1, dtype=jnp.float32) -> jax.Array:
    # nn.init.uniform_(self.scale_weights, a=0.01, b=2.0)
    return jax.random.uniform(key, (s_dim,), dtype=dtype, minval=0.01, maxval=2.0)


if __name__ == "__main__":
    key = jax.random.PRNGKey(0)
    k_w, k_wv, k_x, k_big = jax.random.split(key, 4)

    # Small shapes consistent with the module's usage (per-box feature tensor).
    feats = jax.random.normal(k_x, (2, 8, 32), dtype=jnp.float32)
    w1 = init_scale_weights(k_w, s_dim=1)

    # 1) Default dispatch on tiny tensor -> XLA fast path.
    out_xla = jax.block_until_ready(scale_layer_forward(feats, w1))
    ref1 = feats * w1
    assert out_xla.shape == feats.shape and out_xla.dtype == feats.dtype
    assert jnp.allclose(out_xla, ref1, rtol=1e-6, atol=1e-6)

    # 2) Forced Pallas path on the same tiny tensor (scalar kernel).
    out1 = jax.block_until_ready(scale_layer_forward(feats, w1, force_pallas=True))
    assert jnp.allclose(out1, ref1, rtol=1e-6, atol=1e-6)

    # 3) Per-channel scale (s_dim == last dim) — vector kernel with lane widening.
    wv = init_scale_weights(k_wv, s_dim=feats.shape[-1])
    out2 = jax.block_until_ready(scale_layer_forward(feats, wv, force_pallas=True))
    ref2 = feats * wv
    assert jnp.allclose(out2, ref2, rtol=1e-6, atol=1e-6)

    # 4) bf16 feats stay bf16 end-to-end; multiply is native bf16.
    feats_bf16 = feats.astype(jnp.bfloat16)
    out3 = jax.block_until_ready(
        scale_layer_forward(feats_bf16, w1, force_pallas=True))
    ref3 = (feats_bf16.astype(jnp.float32) * w1).astype(jnp.bfloat16)
    assert out3.dtype == jnp.bfloat16
    assert jnp.allclose(out3.astype(jnp.float32), ref3.astype(jnp.float32),
                        rtol=1e-2, atol=1e-2)

    # 5) Ragged element count -> kernel on the 128-multiple prefix + jnp tail.
    feats_ragged = jax.random.normal(k_x, (2, 8, 33), dtype=jnp.float32)
    out4 = jax.block_until_ready(
        scale_layer_forward(feats_ragged, w1, force_pallas=True))
    assert jnp.allclose(out4, feats_ragged * w1, rtol=1e-6, atol=1e-6)

    # 6) Above-threshold tensor takes the Pallas path through the default
    #    dispatch (exercises multi-tile grid: 1024x1024 -> 2 tiles of 512 rows).
    big = jax.random.normal(k_big, (8, 512, 256), dtype=jnp.float32)   # 4 MiB
    out5 = jax.block_until_ready(scale_layer_forward(big, w1))
    assert jnp.allclose(out5, big * w1, rtol=1e-6, atol=1e-6)

    print("KERNEL_OK")
</pallas_src>

<mosaic_0001>
module attributes {stable_mosaic.version = 11 : i64} {
  func.func @_scale_scalar_kernel(%arg0: i32, %arg1: memref<1xf32, #tpu.memory_space<smem>>, %arg2: memref<1x512xf32, #tpu.memory_space<vmem>>, %arg3: memref<1x512xf32, #tpu.memory_space<vmem>>) attributes {dimension_semantics = [#tpu.dimension_semantics<parallel>], iteration_bounds = array<i64: 1>, scalar_prefetch = 0 : i64, scratch_operands = 0 : i64, tpu.core_type = #tpu.core_type<tc>, window_params = [{transform_indices = @transform_0, window_bounds = array<i64: 1>}, {transform_indices = @transform_1, window_bounds = array<i64: 1, 512>}, {transform_indices = @transform_2, window_bounds = array<i64: 1, 512>}]} {
    %c0 = arith.constant 0 : index
    %0 = memref.load %arg1[%c0] : memref<1xf32, #tpu.memory_space<smem>>
    %c0_0 = arith.constant 0 : index
    %c0_1 = arith.constant 0 : index
    %1 = vector.load %arg2[%c0_0, %c0_1] : memref<1x512xf32, #tpu.memory_space<vmem>>, vector<1x512xf32>
    %2 = vector.broadcast %0 : f32 to vector<1x512xf32>
    %3 = arith.mulf %1, %2 : vector<1x512xf32>
    %c0_2 = arith.constant 0 : index
    %c0_3 = arith.constant 0 : index
    %4 = vector.load %arg3[%c0_2, %c0_3] : memref<1x512xf32, #tpu.memory_space<vmem>>, vector<1x512xf32>
    tpu.vector_store %arg3[%c0_2, %c0_3], %3 {strides = array<i32>} : memref<1x512xf32, #tpu.memory_space<vmem>>, vector<1x512xf32>,
    return
  }
  func.func @transform_0(%arg0: i32) -> i32 {
    %c0_i32 = arith.constant 0 : i32
    %c0_i32_0 = arith.constant 0 : i32
    return %c0_i32 : i32
  }
  func.func @transform_1(%arg0: i32) -> (i32, i32) {
    %c0_i32 = arith.constant 0 : i32
    %c0_i32_0 = arith.constant 0 : i32
    return %arg0, %c0_i32 : i32, i32
  }
  func.func @transform_2(%arg0: i32) -> (i32, i32) {
    %c0_i32 = arith.constant 0 : i32
    %c0_i32_0 = arith.constant 0 : i32
    return %arg0, %c0_i32 : i32, i32
  }
}

</mosaic_0001>

<bundles_post_ra>
// kernel: tpu_custom_call.1
= control target key start
LH: loop header
LB: loop body
LE: loop exit
PB: predicated region body
PF: predicated region fallthrough
CT: control target
= control target key end

     0   :  { %8 = vsyncpa [#allocation4], 0  ;;  %s133_s0 = inlined_call_operand.<no memory space> [shape: f32[1], index: 0, kind: input, shape index: {}]   ;;  %s134_s1 = inlined_call_operand.hbm [shape: f32[1,512], index: 1, kind: input, shape index: {}]   ;;  %s135_s2 = inlined_call_operand.hbm [shape: f32[1,512], index: 2, kind: output, shape index: {}]  }
   0x1   :  { %9 = vsyncpa [#allocation5], 0  ;;  %s17_s11 = sshll.u32 %s134_s1, 4  ;;  %s107_s12 = smov [#allocation3]   ;;  %s18_s11 = int_to_ptr.hbm [resolvable:$true] %s17_s11 }
   0x2   :  { %s19_s13 = sshll.u32 %s107_s12, 4  ;;  %s20_s13 = int_to_ptr.vmem [resolvable:$true] %s19_s13 }
   0x3   :  { %22 = dma.hbm_to_vmem [thread:$0]  %s18_s11, 64, %s20_s13, [#allocation4]  }
   0x4   :  { %103 = dma.done.wait [#allocation4], 64  }
   0x5   :  { %104 = vsyncadd [#allocation4], 4294967232  ;;  %v31_v0 = vlaneseq  ;;  %v29_v1 = vstv %s133_s0  ;;  %s108_s16 = smov [#allocation6]   ;;  %s43_s20 = sshll.u32 %s135_s2, 4  ;;  %v28_v2 = vld [vmem:[#allocation3] sm:$0xf]  ;;  %s44_s20 = int_to_ptr.hbm [resolvable:$true] %s43_s20 }
   0x6   :  { %s41_s17 = sshll.u32 %s108_s16, 4  ;;  %v30_v3 = vmul.f32 %v29_v1, %v28_v2  ;;  %s42_s17 = int_to_ptr.vmem [resolvable:$true] %s41_s17 }
   0x7   :  { %vm33_vm0 = vcmp.lt.s32.totalorder %v31_v0, 512 }
   0x8   :  { %35 = vst.msk [vmem:[#allocation6] sm:$0xf] %vm33_vm0, %v30_v3 }
   0x9   :  { %46 = dma.vmem_to_hbm [thread:$0]  %s42_s17, 64, %s44_s20, [#allocation5]  }
   0xa   :  { %105 = dma.done.wait [#allocation5], 64  }
   0xb   :  { %106 = vsyncadd [#allocation5], 4294967232 }
   0xc   :  { %51 = vsyncpa [#allocation4], 1 }
   0xd   :  { %52 = vsyncpa [#allocation5], 1 }

</bundles_post_ra>
